<compile_context>
chip_gen: v7x
topology: tpu7x:2x2x1
jax: 0.10.0
libtpu: 0.0.40
codegen_flags: <defaults>
</compile_context>

<pallas_src>
import functools

import jax
import jax.numpy as jnp
from jax.experimental import pallas as pl
from jax.experimental.pallas import tpu as pltpu


def char_cnn_kernel(*refs, filters, word_len, emb):
    """One word tile.

    refs = (x_ref, wm_ref, bias_ref, w_0, w_1, ..., out_ref)
      x_ref   : (tn, word_len, emb) f32   character embeddings for tn words
      wm_ref  : (tn, 1)             f32   word mask
      bias_ref: (1, hidden)         f32   all conv biases, channel-concatenated
      w_k     : (fw_k, emb, fn_k)   bf16  conv weights (per window offset)
      out_ref : (tn, hidden)        f32   pooled word features (masked)
    """
    n_conv = len(filters)
    x_ref, wm_ref, bias_ref = refs[0], refs[1], refs[2]
    out_ref = refs[3 + n_conv]

    tn = x_ref.shape[0]
    # One contiguous slab for all char positions -> big MXU matmuls
    # (bf16 inputs, f32 accumulate).
    x2 = x_ref[...].reshape(tn * word_len, emb).astype(jnp.bfloat16)  # (tn*W, E)
    wm = wm_ref[...]                                                  # (tn, 1)

    pooled = []
    for k, (fw, fn) in enumerate(filters):
        w_ref = refs[3 + k]                                  # (fw, E, fn) bf16
        out_len = word_len - fw + 1

        # conv[n, t, c] = sum_dw x[n, t+dw, :] @ W[dw]  — shift-and-add of full
        # slab projections (fw matmuls total instead of fw*out_len tiny ones).
        acc = None
        for dw in range(fw):
            p = jnp.dot(x2, w_ref[dw],
                        preferred_element_type=jnp.float32)  # (tn*W, fn)
            part = p.reshape(tn, word_len, fn)[:, dw:dw + out_len, :]
            acc = part if acc is None else acc + part

        pooled.append(jnp.max(acc, axis=1))                  # (tn, fn)

    res = pooled[0] if n_conv == 1 else jnp.concatenate(pooled, axis=-1)
    # Fused per-channel bias + ReLU + word-mask on the lane-dense (tn, H) tile,
    # then one unmasked store.
    res = jnp.maximum(res + bias_ref[...], 0.0) * wm
    out_ref[...] = res.astype(out_ref.dtype)


def char_cnn_forward(x, char_mask, word_mask, params, *, tn=None):
    """CharCNN.forward: (batch, seq_len, word_len, E) -> (seq_len, batch, H).

    params: list of (weight, bias) with PyTorch Conv2d shapes
            weight (fn, 1, fw, emb), bias (fn,).
    char_mask is unused (as in the reference module).
    """
    del char_mask  # unused by the PyTorch reference forward as well
    batch, seq_len, word_len, emb = x.shape
    n = batch * seq_len
    if tn is None:
        tn = n
    assert n % tn == 0

    # Free reshapes (leading-dim merges only) — no HBM transpose pass over x.
    x_flat = x.reshape(n, word_len, emb)
    wm_flat = word_mask.reshape(n, 1).astype(jnp.float32)

    filters = []
    weight_inputs = []
    biases = []
    in_specs = [
        pl.BlockSpec((tn, word_len, emb), lambda i: (i, 0, 0)),
        pl.BlockSpec((tn, 1), lambda i: (i, 0)),
    ]
    weight_specs = []
    for w, b in params:
        fn, _, fw, _ = w.shape
        filters.append((fw, fn))
        # (fn, 1, fw, emb) -> (fw, emb, fn); stage weights in bf16 for the MXU.
        w_t = jnp.transpose(w[:, 0, :, :], (1, 2, 0)).astype(jnp.bfloat16)
        weight_inputs.append(w_t)
        biases.append(b.astype(jnp.float32))
        weight_specs.append(pl.BlockSpec((fw, emb, fn), lambda i: (0, 0, 0)))
    hidden = sum(fn for _, fn in filters)
    bias_all = jnp.concatenate(biases, axis=0).reshape(1, hidden)
    in_specs += [pl.BlockSpec((1, hidden), lambda i: (0, 0))] + weight_specs

    kernel = functools.partial(char_cnn_kernel, filters=tuple(filters),
                               word_len=word_len, emb=emb)
    out = pl.pallas_call(
        kernel,
        out_shape=jax.ShapeDtypeStruct((n, hidden), jnp.float32),
        grid_spec=pltpu.PrefetchScalarGridSpec(
            num_scalar_prefetch=0,
            grid=(n // tn,),                     # word tiles only (no seq axis)
            in_specs=in_specs,
            out_specs=pl.BlockSpec((tn, hidden), lambda i: (i, 0)),
        ),
        compiler_params=pltpu.CompilerParams(
            dimension_semantics=("parallel",)),  # megacore-shardable on v7x
    )(x_flat, wm_flat, bias_all, *weight_inputs)

    # Only the tiny output gets a transpose: (B*S, H) -> (S, B, H).
    return out.reshape(batch, seq_len, hidden).transpose(1, 0, 2)


def char_cnn_reference(x, word_mask, params):
    """Pure-JAX reference of the PyTorch forward (f32)."""
    batch, seq_len, word_len, emb = x.shape
    xf = x.reshape(-1, word_len, emb)
    feats = []
    for w, b in params:
        fn, _, fw, _ = w.shape
        out_len = word_len - fw + 1
        conv = jnp.stack(
            [jnp.einsum('nwe,cwe->nc', xf[:, t:t + fw, :], w[:, 0])
             for t in range(out_len)], axis=1) + b[None, None, :]
        feats.append(jnp.max(jax.nn.relu(conv), axis=1))
    out = jnp.concatenate(feats, axis=-1).reshape(batch, seq_len, -1)
    out = out * word_mask[..., None]
    return out.transpose(1, 0, 2)


if __name__ == "__main__":
    batch, seq_len, word_len, emb = 2, 8, 8, 32
    filters_size = (2, 3)
    filters_num = (64, 64)            # hidden = 128 (lane-dense output)

    key = jax.random.PRNGKey(0)
    kx, kcm, kwm, *conv_keys = jax.random.split(key, 3 + 2 * len(filters_size))

    x = jax.random.normal(kx, (batch, seq_len, word_len, emb), jnp.float32)
    # prefix char masks (interface parity only; unused by the module)
    char_lens = jax.random.randint(kcm, (batch, seq_len), 1, word_len + 1)
    char_mask = (jnp.arange(word_len)[None, None, :]
                 < char_lens[:, :, None]).astype(jnp.float32)
    word_mask = (jax.random.uniform(kwm, (batch, seq_len)) > 0.3).astype(jnp.float32)

    params = []
    for i, (fw, fn) in enumerate(zip(filters_size, filters_num)):
        kwgt, kb = conv_keys[2 * i], conv_keys[2 * i + 1]
        bound = 1.0 / (fw * emb) ** 0.5          # PyTorch Conv2d default init
        w = jax.random.uniform(kwgt, (fn, 1, fw, emb), jnp.float32, -bound, bound)
        b = jax.random.uniform(kb, (fn,), jnp.float32, -bound, bound)
        params.append((w, b))

    out = char_cnn_forward(x, char_mask, word_mask, params, tn=8)
    out = jax.block_until_ready(out)

    hidden = sum(filters_num)
    assert out.shape == (seq_len, batch, hidden)
    assert bool(jnp.all(jnp.isfinite(out)))

    ref = char_cnn_reference(x, word_mask, params)
    assert bool(jnp.allclose(out, ref, rtol=3e-2, atol=3e-2)), \
        float(jnp.max(jnp.abs(out - ref)))

    print("KERNEL_OK")
</pallas_src>

<mosaic_0001>
module attributes {stable_mosaic.version = 11 : i64} {
  func.func @char_cnn_kernel(%arg0: i32, %arg1: memref<8x8x32xf32, #tpu.memory_space<vmem>>, %arg2: memref<8x1xf32, #tpu.memory_space<vmem>>, %arg3: memref<1x128xf32, #tpu.memory_space<vmem>>, %arg4: memref<2x32x64xbf16, #tpu.memory_space<vmem>>, %arg5: memref<3x32x64xbf16, #tpu.memory_space<vmem>>, %arg6: memref<8x128xf32, #tpu.memory_space<vmem>>) attributes {dimension_semantics = [#tpu.dimension_semantics<parallel>], iteration_bounds = array<i64: 2>, scalar_prefetch = 0 : i64, scratch_operands = 0 : i64, tpu.core_type = #tpu.core_type<tc>, window_params = [{transform_indices = @transform_0, window_bounds = array<i64: 8, 8, 32>}, {transform_indices = @transform_1, window_bounds = array<i64: 8, 1>}, {pipeline_mode = #tpu.pipeline_mode<synchronous>, transform_indices = @transform_2, window_bounds = array<i64: 1, 128>}, {pipeline_mode = #tpu.pipeline_mode<synchronous>, transform_indices = @transform_3, window_bounds = array<i64: 2, 32, 64>}, {pipeline_mode = #tpu.pipeline_mode<synchronous>, transform_indices = @transform_4, window_bounds = array<i64: 3, 32, 64>}, {transform_indices = @transform_5, window_bounds = array<i64: 8, 128>}]} {
    %c0 = arith.constant 0 : index
    %c0_0 = arith.constant 0 : index
    %c0_1 = arith.constant 0 : index
    %0 = vector.load %arg1[%c0, %c0_0, %c0_1] : memref<8x8x32xf32, #tpu.memory_space<vmem>>, vector<8x8x32xf32>
    %1 = vector.shape_cast %0 : vector<8x8x32xf32> to vector<64x32xf32>
    %2 = arith.truncf %1 : vector<64x32xf32> to vector<64x32xbf16>
    %c0_2 = arith.constant 0 : index
    %c0_3 = arith.constant 0 : index
    %3 = vector.load %arg2[%c0_2, %c0_3] : memref<8x1xf32, #tpu.memory_space<vmem>>, vector<8x1xf32>
    %c0_4 = arith.constant 0 : index
    %c0_5 = arith.constant 0 : index
    %c0_6 = arith.constant 0 : index
    %4 = vector.load %arg4[%c0_4, %c0_5, %c0_6] : memref<2x32x64xbf16, #tpu.memory_space<vmem>>, vector<1x32x64xbf16>
    %5 = vector.shape_cast %4 : vector<1x32x64xbf16> to vector<32x64xbf16>
    %cst = arith.constant dense<0.000000e+00> : vector<64x64xf32>
    %6 = tpu.matmul %2, %5, %cst {dimension_numbers = #tpu.dot_dimension_numbers<[1], [0], [0], [1], [0, 0, 1, 1], [], []>} : vector<64x32xbf16>, vector<32x64xbf16>, vector<64x64xf32> -> vector<64x64xf32>
    %7 = vector.shape_cast %6 : vector<64x64xf32> to vector<8x8x64xf32>
    %8 = vector.extract_strided_slice %7 {offsets = [0, 0, 0], sizes = [8, 7, 64], strides = [1, 1, 1]} : vector<8x8x64xf32> to vector<8x7x64xf32>
    %c1 = arith.constant 1 : index
    %c0_7 = arith.constant 0 : index
    %c0_8 = arith.constant 0 : index
    %9 = vector.load %arg4[%c1, %c0_7, %c0_8] : memref<2x32x64xbf16, #tpu.memory_space<vmem>>, vector<1x32x64xbf16>
    %10 = vector.shape_cast %9 : vector<1x32x64xbf16> to vector<32x64xbf16>
    %cst_9 = arith.constant dense<0.000000e+00> : vector<64x64xf32>
    %11 = tpu.matmul %2, %10, %cst_9 {dimension_numbers = #tpu.dot_dimension_numbers<[1], [0], [0], [1], [0, 0, 1, 1], [], []>} : vector<64x32xbf16>, vector<32x64xbf16>, vector<64x64xf32> -> vector<64x64xf32>
    %12 = vector.shape_cast %11 : vector<64x64xf32> to vector<8x8x64xf32>
    %13 = vector.extract_strided_slice %12 {offsets = [0, 1, 0], sizes = [8, 7, 64], strides = [1, 1, 1]} : vector<8x8x64xf32> to vector<8x7x64xf32>
    %14 = arith.addf %8, %13 : vector<8x7x64xf32>
    %cst_10 = arith.constant dense<0xFF800000> : vector<8x64xf32>
    %15 = vector.multi_reduction <maximumf>, %14, %cst_10 [1] : vector<8x7x64xf32> to vector<8x64xf32>
    %c0_11 = arith.constant 0 : index
    %c0_12 = arith.constant 0 : index
    %c0_13 = arith.constant 0 : index
    %16 = vector.load %arg5[%c0_11, %c0_12, %c0_13] : memref<3x32x64xbf16, #tpu.memory_space<vmem>>, vector<1x32x64xbf16>
    %17 = vector.shape_cast %16 : vector<1x32x64xbf16> to vector<32x64xbf16>
    %cst_14 = arith.constant dense<0.000000e+00> : vector<64x64xf32>
    %18 = tpu.matmul %2, %17, %cst_14 {dimension_numbers = #tpu.dot_dimension_numbers<[1], [0], [0], [1], [0, 0, 1, 1], [], []>} : vector<64x32xbf16>, vector<32x64xbf16>, vector<64x64xf32> -> vector<64x64xf32>
    %19 = vector.shape_cast %18 : vector<64x64xf32> to vector<8x8x64xf32>
    %20 = vector.extract_strided_slice %19 {offsets = [0, 0, 0], sizes = [8, 6, 64], strides = [1, 1, 1]} : vector<8x8x64xf32> to vector<8x6x64xf32>
    %c1_15 = arith.constant 1 : index
    %c0_16 = arith.constant 0 : index
    %c0_17 = arith.constant 0 : index
    %21 = vector.load %arg5[%c1_15, %c0_16, %c0_17] : memref<3x32x64xbf16, #tpu.memory_space<vmem>>, vector<1x32x64xbf16>
    %22 = vector.shape_cast %21 : vector<1x32x64xbf16> to vector<32x64xbf16>
    %cst_18 = arith.constant dense<0.000000e+00> : vector<64x64xf32>
    %23 = tpu.matmul %2, %22, %cst_18 {dimension_numbers = #tpu.dot_dimension_numbers<[1], [0], [0], [1], [0, 0, 1, 1], [], []>} : vector<64x32xbf16>, vector<32x64xbf16>, vector<64x64xf32> -> vector<64x64xf32>
    %24 = vector.shape_cast %23 : vector<64x64xf32> to vector<8x8x64xf32>
    %25 = vector.extract_strided_slice %24 {offsets = [0, 1, 0], sizes = [8, 6, 64], strides = [1, 1, 1]} : vector<8x8x64xf32> to vector<8x6x64xf32>
    %26 = arith.addf %20, %25 : vector<8x6x64xf32>
    %c2 = arith.constant 2 : index
    %c0_19 = arith.constant 0 : index
    %c0_20 = arith.constant 0 : index
    %27 = vector.load %arg5[%c2, %c0_19, %c0_20] : memref<3x32x64xbf16, #tpu.memory_space<vmem>>, vector<1x32x64xbf16>
    %28 = vector.shape_cast %27 : vector<1x32x64xbf16> to vector<32x64xbf16>
    %cst_21 = arith.constant dense<0.000000e+00> : vector<64x64xf32>
    %29 = tpu.matmul %2, %28, %cst_21 {dimension_numbers = #tpu.dot_dimension_numbers<[1], [0], [0], [1], [0, 0, 1, 1], [], []>} : vector<64x32xbf16>, vector<32x64xbf16>, vector<64x64xf32> -> vector<64x64xf32>
    %30 = vector.shape_cast %29 : vector<64x64xf32> to vector<8x8x64xf32>
    %31 = vector.extract_strided_slice %30 {offsets = [0, 2, 0], sizes = [8, 6, 64], strides = [1, 1, 1]} : vector<8x8x64xf32> to vector<8x6x64xf32>
    %32 = arith.addf %26, %31 : vector<8x6x64xf32>
    %cst_22 = arith.constant dense<0xFF800000> : vector<8x64xf32>
    %33 = vector.multi_reduction <maximumf>, %32, %cst_22 [1] : vector<8x6x64xf32> to vector<8x64xf32>
    %34 = tpu.concatenate %15, %33 in 1 : vector<8x64xf32>, vector<8x64xf32> -> vector<8x128xf32>
    %c0_23 = arith.constant 0 : index
    %c0_24 = arith.constant 0 : index
    %35 = vector.load %arg3[%c0_23, %c0_24] : memref<1x128xf32, #tpu.memory_space<vmem>>, vector<1x128xf32>
    %36 = vector.broadcast %35 : vector<1x128xf32> to vector<8x128xf32>
    %37 = arith.addf %34, %36 : vector<8x128xf32>
    %cst_25 = arith.constant 0.000000e+00 : f32
    %38 = vector.broadcast %cst_25 : f32 to vector<8x128xf32>
    %39 = arith.maximumf %37, %38 : vector<8x128xf32>
    %40 = vector.broadcast %3 : vector<8x1xf32> to vector<8x128xf32>
    %41 = arith.mulf %39, %40 : vector<8x128xf32>
    %c0_26 = arith.constant 0 : index
    %c0_27 = arith.constant 0 : index
    %42 = vector.load %arg6[%c0_26, %c0_27] : memref<8x128xf32, #tpu.memory_space<vmem>>, vector<8x128xf32>
    tpu.vector_store %arg6[%c0_26, %c0_27], %41 {strides = array<i32>} : memref<8x128xf32, #tpu.memory_space<vmem>>, vector<8x128xf32>,
    return
  }
  func.func @transform_0(%arg0: i32) -> (i32, i32, i32) {
    %c0_i32 = arith.constant 0 : i32
    %c0_i32_0 = arith.constant 0 : i32
    %c0_i32_1 = arith.constant 0 : i32
    return %arg0, %c0_i32, %c0_i32_0 : i32, i32, i32
  }
  func.func @transform_1(%arg0: i32) -> (i32, i32) {
    %c0_i32 = arith.constant 0 : i32
    %c0_i32_0 = arith.constant 0 : i32
    return %arg0, %c0_i32 : i32, i32
  }
  func.func @transform_2(%arg0: i32) -> (i32, i32) {
    %c0_i32 = arith.constant 0 : i32
    %c0_i32_0 = arith.constant 0 : i32
    %c0_i32_1 = arith.constant 0 : i32
    return %c0_i32, %c0_i32_0 : i32, i32
  }
  func.func @transform_3(%arg0: i32) -> (i32, i32, i32) {
    %c0_i32 = arith.constant 0 : i32
    %c0_i32_0 = arith.constant 0 : i32
    %c0_i32_1 = arith.constant 0 : i32
    %c0_i32_2 = arith.constant 0 : i32
    return %c0_i32, %c0_i32_0, %c0_i32_1 : i32, i32, i32
  }
  func.func @transform_4(%arg0: i32) -> (i32, i32, i32) {
    %c0_i32 = arith.constant 0 : i32
    %c0_i32_0 = arith.constant 0 : i32
    %c0_i32_1 = arith.constant 0 : i32
    %c0_i32_2 = arith.constant 0 : i32
    return %c0_i32, %c0_i32_0, %c0_i32_1 : i32, i32, i32
  }
  func.func @transform_5(%arg0: i32) -> (i32, i32) {
    %c0_i32 = arith.constant 0 : i32
    %c0_i32_0 = arith.constant 0 : i32
    return %arg0, %c0_i32 : i32, i32
  }
}

</mosaic_0001>

<bundles_post_ra>
// kernel: tpu_custom_call.1
= control target key start
LH: loop header
LB: loop body
LE: loop exit
PB: predicated region body
PF: predicated region fallthrough
CT: control target
= control target key end

     0   :  { %10 = vsyncpa [#allocation3], 0  ;;  %s1870_s0 = inlined_call_operand.hbm [shape: f32[16,8,32], index: 0, kind: input, shape index: {}]   ;;  %s1871_s1 = inlined_call_operand.vmem [shape: f32[16,1], index: 1, kind: input, shape index: {}]   ;;  %s1872_s2 = inlined_call_operand.vmem [shape: f32[1,128], index: 2, kind: input, shape index: {}]   ;;  %s1873_s3 = inlined_call_operand.hbm [shape: bf16[2,32,64], index: 3, kind: input, shape index: {}]   ;;  %s1874_s4 = inlined_call_operand.hbm [shape: bf16[3,32,64], index: 4, kind: input, shape index: {}]   ;;  %s1875_s5 = inlined_call_operand.hbm [shape: f32[16,128], index: 5, kind: output, shape index: {}]  }
   0x1   :  { %12 = vsyncpa [#allocation3 + $0x1], 0 }
   0x2   :  { %13 = vsyncpa [#allocation6], 0 }
   0x3   :  { %14 = vsyncpa [#allocation4], 0 }
   0x4   :  { %16 = vsyncpa [#allocation4 + $0x1], 0  ;;  %s1535_s18 = smov 0   ;;  %s1537_s19 = smov 0  }
   0x5   :  { %s1539_s20 = smov 0   ;;  %s1541_s21 = smov 0  }
   0x6 LB: > { %s1556_s22 = sadd.s32 4294967295, %s1493_s21   ;;  %s1109_s23 = sadd.s32 4294967294, %s1493_s21   ;;  %s1493_s21 = sphi %s1541_s21, %s1895_s21   ;;  %s1489_s20 = sphi %s1539_s20, %s1894_s20   ;;  %s1485_s19 = sphi %s1537_s19, %s1893_s19   ;;  %s1481_s18 = sphi %s1535_s18, %s1892_s18  }
   0x7   : > { %p42_p0 = scmp.ne.s32.totalorder %s1485_s19, %s1481_s18  ;;  %p1876_p1 = scmp.eq.s32.totalorder %s1556_s22, 0 }
   0x8   : > { %p161_p3 = scmp.eq.s32.totalorder %s1109_s23, 1  ;;  %p1110_p5 = scmp.ge.s32.totalorder %s1493_s21, 1 }
   0x9   : > { %p1565_p4 = por %p1876_p1, %p42_p0  ;;  %p168_p7 = scmp.lt.s32.totalorder %s1493_s21, 3 }
   0xa   : > { %p1570_p6 = por %p161_p3, %p42_p0  ;;  %s1495_s27 = smov [#allocation5]  }
   0xb   : > { %s1879_s24 = scalar_select %p1565_p4, 1, 0 }
   0xc   : > { %s1880_s25 = scalar_select %p1570_p6, 1, 0 }
   0xd   : > { %p1575_p8 = pnand %p1110_p5, %p168_p7  ;;  %s183_s28 = sshll.u32 %s1495_s27, 4  ;;  %s1579_s28 = int_to_ptr.vmem [resolvable:$true] %s183_s28 }
   0xe   : > { %s1496_s30 = smov [#allocation7]   ;;  %s1337_s9 = scalar_lea.hbm %s1873_s3, 512 }
   0xf   : > { %p1265_p9 = pneg %p1575_p8  ;;  %s196_s6 = sshll.u32 %s1496_s30, 4  ;;  %s1590_s6 = int_to_ptr.vmem [resolvable:$true] %s196_s6 }
  0x10   : > { %p1338_p12 = scmp.ne.s32.totalorder %s1873_s3, %s1337_s9  ;;  %p1344_p5 = scmp.lt.u32.totalorder %s1337_s9, %s1873_s3 }
  0x11   : > { %p1586_p11 = pnand %p1265_p9, %p1876_p1 }
  0x13   : > { %p1339_p13 = pneg %p1586_p11 }
  0x15   : > { %p1340_p0 = pnand %p1339_p13, %p1338_p12 }
  0x17   : > { %p1341_p3 = pneg %p1340_p0 }
  0x19   : > { %p1346_p7 = pnand %p1344_p5, %p1341_p3 }
  0x1b   : > { %1349 = shalt.err (!%p1346_p7)
}
  0x1c   : > { %s1350_s14 = scalar_lea.vmem %s1579_s28, 512  ;;  %p1358_p2 = scmp.lt.s32.totalorder %s1579_s28, %s1579_s28 }
  0x1d   : > { %p1351_p9 = scmp.ne.s32.totalorder %s1579_s28, %s1350_s14  ;;  %p1359_p12 = scmp.lt.s32.totalorder %s1350_s14, %s1350_s14 }
  0x1f   : > { %p1353_p10 = pnand %p1351_p9, %p1339_p13  ;;  %p1360_p0 = por %p1359_p12, %p1358_p2 }
  0x21   : > { %p1354_p1 = pneg %p1353_p10 }
  0x23   : > { %p1361_p6 = pnand %p1360_p0, %p1354_p1 }
  0x25   : > { %1364 = shalt.err (!%p1361_p6)
}
  0x26   : > { %s1497_s15 = smov 64   ;;  %s1498_s16 = smov 4  }
  0x27   : > { %1268 = dma.hbm_to_vmem [thread:$0]  (!%p1586_p11), %s1873_s3, 512, %s1579_s28, [#allocation6], %s1497_s15, %s1497_s15, %s1498_s16  }
  0x28   : > { %s1365_s7 = scalar_lea.hbm %s1874_s4, 768 }
  0x29   : > { %p1366_p2 = scmp.ne.s32.totalorder %s1874_s4, %s1365_s7  ;;  %p1372_p10 = scmp.lt.u32.totalorder %s1365_s7, %s1874_s4 }
  0x2b   : > { %p1368_p1 = pnand %p1366_p2, %p1339_p13 }
  0x2d   : > { %p1369_p6 = pneg %p1368_p1 }
  0x2f   : > { %p1374_p3 = pnand %p1372_p10, %p1369_p6 }
  0x31   : > { %1377 = shalt.err (!%p1374_p3)
}
  0x32   : > { %s1378_s28 = scalar_lea.vmem %s1590_s6, 768  ;;  %p1386_p12 = scmp.lt.s32.totalorder %s1590_s6, %s1590_s6 }
  0x33   : > { %p1379_p5 = scmp.ne.s32.totalorder %s1590_s6, %s1378_s28  ;;  %p1387_p0 = scmp.lt.s32.totalorder %s1378_s28, %s1378_s28 }
  0x35   : > { %p1381_p7 = pnand %p1379_p5, %p1339_p13  ;;  %p1388_p2 = por %p1387_p0, %p1386_p12 }
  0x37   : > { %p1382_p9 = pneg %p1381_p7 }
  0x39   : > { %p1389_p1 = pnand %p1388_p2, %p1382_p9 }
  0x3b   : > { %1392 = shalt.err (!%p1389_p1)
}
  0x3c   : > { %1271 = dma.hbm_to_vmem [thread:$0]  (!%p1586_p11), %s1874_s4, 768, %s1590_s6, [#allocation6], %s1497_s15, %s1497_s15, %s1498_s16  }
  0x3d   : > { %s1645_s14 = sadd.s32 1, %s1493_s21   ;;  %s29_s29 = sadd.s32 1, %s1489_s20 }
  0x3e   : > { %s26_s17 = ssub.s32 %s1493_s21, %s1645_s14  ;;  %p36_p13 = scmp.ne.s32.totalorder %s1489_s20, %s1485_s19 }
  0x3f   : > { %p27_p6 = scmp.eq.s32.totalorder %s26_s17, 0  ;;  %p37_p10 = scmp.eq.s32.totalorder %s1493_s21, 0 }
  0x40   : > { %p1883_p3 = scmp.eq.s32.totalorder %s1556_s22, 1  ;;  %p1282_p7 = scmp.lt.s32.totalorder %s1493_s21, 2 }
  0x41   : > { %s1661_s27 = scalar_select %p27_p6, %s1489_s20, %s29_s29  }
  0x42   : > { %p1655_p5 = por %p1883_p3, %p36_p13  ;;  %p38_p9 = por %p37_p10, %p36_p13 }
  0x43   : > { %s210_s30 = sand.u32 1, %s1489_s20   ;;  %s1158_s6 = sshll.u32 %s1493_s21, 10 }
  0x44   : > { %s1884_s23 = scalar_select %p1655_p5, 1, 0 }
  0x45   : > { %s1114_s7 = sshll.u32 %s210_s30, 6  ;;  %s1668_s8 = scalar_lea.hbm %s1870_s0, %s1158_s6 }
  0x46   : > { %s214_s9 = scalar_lea.vmem [#allocation2], %s1114_s7  ;;  %p1672_p11 = pnand %p1282_p7, %p38_p9 }
  0x47   : > { %s221_s10 = sshll.u32 %s214_s9, 4  ;;  %s1676_s28 = scalar_lea.sflag [#allocation3], %s210_s30  ;;  %s1670_s10 = int_to_ptr.vmem [resolvable:$true] %s221_s10 }
  0x48   : > { %s1393_s12 = scalar_lea.hbm %s1668_s8, 1024  ;;  %p1395_p0 = pneg %p1672_p11 }
  0x49   : > { %p1394_p12 = scmp.ne.s32.totalorder %s1668_s8, %s1393_s12  ;;  %s1398_s17 = scalar_lea.hbm %s1870_s0, 2048 }
  0x4a   : > { %p1399_p13 = scmp.lt.u32.totalorder %s1668_s8, %s1870_s0  ;;  %p1400_p6 = scmp.lt.u32.totalorder %s1398_s17, %s1393_s12 }
  0x4b   : > { %p1396_p2 = pnand %p1395_p0, %p1394_p12  ;;  %p1402_p3 = scmp.lt.u32.totalorder %s1393_s12, %s1668_s8 }
  0x4c   : > { %p1401_p10 = por %p1400_p6, %p1399_p13 }
  0x4d   : > { %p1397_p1 = pneg %p1396_p2 }
  0x4e   : > { %p1403_p7 = por %p1402_p3, %p1401_p10 }
  0x50   : > { %p1404_p9 = pnand %p1403_p7, %p1397_p1 }
  0x52   : > { %1407 = shalt.err (!%p1404_p9)
}
  0x53   : > { %s1408_s30 = scalar_lea.vmem %s1670_s10, 1024  ;;  %s1499_s15 = smov [#allocation2]  }
  0x54   : > { %p1409_p12 = scmp.ne.s32.totalorder %s1670_s10, %s1408_s30  ;;  %s1413_s16 = sshll.u32 %s1499_s15, 4  ;;  %s1414_s16 = int_to_ptr.vmem [resolvable:$false] %s1413_s16 }
  0x55   : > { %s1415_s9 = scalar_lea.vmem %s1414_s16, 2048  ;;  %p1416_p4 = scmp.lt.s32.totalorder %s1670_s10, %s1414_s16 }
  0x56   : > { %p1411_p2 = pnand %p1409_p12, %p1395_p0  ;;  %p1417_p13 = scmp.lt.s32.totalorder %s1415_s9, %s1408_s30 }
  0x58   : > { %p1412_p5 = pneg %p1411_p2  ;;  %p1418_p6 = por %p1417_p13, %p1416_p4 }
  0x5a   : > { %p1419_p10 = pnand %p1418_p6, %p1412_p5 }
  0x5c   : > { %1422 = shalt.err (!%p1419_p10)
}
  0x5d   : > { %s1500_s12 = smov 128   ;;  %s1501_s13 = smov 8  }
  0x5e   : > { %1275 = dma.hbm_to_vmem [thread:$0]  (!%p1672_p11), %s1668_s8, 1024, %s1670_s10, %s1676_s28, %s1500_s12, %s1500_s12, %s1501_s13  }
  0x5f   : > { %240 = sbr.rel (%p1575_p8) target bundleno = 525 (0x20d), region = 40  ;;  %s1707_s29 = sand.u32 (!%p1575_p8), 1, %s1485_s19  }
  0x60   : > { %s1118_s17 = sshll.u32 (!%p1575_p8), %s1707_s29, 6  ;;  %s243_s7 = scalar_lea.sflag (!%p1575_p8), [#allocation3], %s1707_s29 }
  0x61   : > { %s246_s6 = scalar_lea.vmem (!%p1575_p8), [#allocation2], %s1118_s17  ;;  %p1886_p4 = scmp.ne.s32.totalorder (!%p1575_p8), %s1879_s24, 0 }
  0x66   : > { %1468 = dma.done.wait (%p1886_p4), %s243_s7, 1024  }
  0x67   : > { %1470 = vsyncadd (%p1886_p4), %s243_s7, 4294966272  ;;  %p1887_p5 = scmp.eq.s32.totalorder %s1556_s22, 0 }
  0x69   : > { %1472 = dma.done.wait (%p1887_p5), [#allocation6], 1280   ;;  %p1888_p11 = pmov %p1887_p5 }
  0x6a   : > { %v1327_v0 = vld [vmem:[#allocation5] sm:$0xff]   ;;  %v1328_v1 = vld [vmem:[#allocation5 + $0x8] sm:$0xff]   ;;  %vm320_vm0 = vcmask 261120   ;;  %v293_v7 = vld [vmem:[%s246_s6 + $0x10] sm:$0xff]  ;;  %p286_p8 = scmp.lt.s32.totalorder %s1556_s22, 1  ;;  %v1502_v22 = vmov 0  }
  0x6b   : > { %1474 = vsyncadd (%p1888_p11), [#allocation6], 4294966016  ;;  %1189 = vmatprep.subr.bf16.mxu0 %v1327_v0  ;;  %1249 = vmatprep.subr.bf16.mxu1 %v1327_v0  ;;  %v291_v2 = vld [vmem:[%s246_s6] sm:$0xff]  ;;  %v292_v3 = vld [vmem:[%s246_s6 + $0x8] sm:$0xff]  ;;  %vm512_vm1 = vcmask 522240   ;;  %vm943_vm2 = vcmask 1041409  }
  0x6c   : > { %v295_v4 = vld [vmem:[%s246_s6 + $0x20] sm:$0xff]  ;;  %1190 = vmatpush3.bf16.msra.mxu0 %v1327_v0  ;;  %1251 = vmatpush3.bf16.msra.mxu1 %v1327_v0  ;;  %v299_v5 = vpack.c.bf16 %v292_v3, %v291_v2  ;;  %v296_v6 = vld [vmem:[%s246_s6 + $0x28] sm:$0xff]  ;;  %v294_v8 = vld [vmem:[%s246_s6 + $0x18] sm:$0xff]  ;;  %s287_s24 = scalar_select %p286_p8, %s1556_s22, 1  ;;  %vm878_vm3 = vcmask 521216   ;;  %vm945_vm4 = vcmask 1042434  }
  0x6d   : > { %1191 = vmatprep.subr.bf16.mxu0 %v1328_v1  ;;  %1250 = vmatprep.subr.bf16.mxu1 %v1328_v1  ;;  %v301_v9 = vpack.c.bf16 %v296_v6, %v295_v4  ;;  %v297_v10 = vld [vmem:[%s246_s6 + $0x30] sm:$0xff]  ;;  %v298_v11 = vld [vmem:[%s246_s6 + $0x38] sm:$0xff]  ;;  %v300_v13 = vpack.c.bf16 %v294_v8, %v293_v7  ;;  %v1330_v15 = vld [vmem:[#allocation7] sm:$0xff]   ;;  %vm947_vm5 = vcmask 1043459   ;;  %vm949_vm6 = vcmask 1044484   ;;  %s1503_s28 = smov 64  }
  0x6e   : > { %1193 = vmatprep.mubr.msk.bf16.mxu0 %vm320_vm0, %v299_v5  ;;  %v1329_v12 = vld [vmem:[#allocation5 + $0x10] sm:$0xff]   ;;  %v302_v14 = vpack.c.bf16 %v298_v11, %v297_v10  ;;  %v1331_v16 = vld [vmem:[#allocation5 + $0x18] sm:$0xff]   ;;  %v1332_v17 = vld [vmem:[#allocation7 + $0x8] sm:$0xff]   ;;  %s1122_s26 = sshll.u32 %s287_s24, 3  ;;  %1326 = vset.pattern.permute.xlu0 %v1502_v22  ;;  %vm951_vm7 = vcmask 1045509   ;;  %vm953_vm8 = vcmask 1046534  }
  0x6f   : > { %1197 = vmatprep.mubr.msk.bf16.mxu1 %vm320_vm0, %v301_v9  ;;  %v1333_v18 = vld [vmem:[#allocation7 + $0x10] sm:$0xff]   ;;  %v1334_v19 = vld [vmem:[#allocation7 + $0x20] sm:$0xff]   ;;  %v1335_v20 = vld [vmem:[#allocation7 + $0x18] sm:$0xff]   ;;  %s289_s11 = scalar_lea.vmem %s1871_s1, %s1122_s26  ;;  %vm955_vm9 = vcmask 1047559   ;;  %s1121_s30 = sshll.u32 %s1707_s29, 3  ;;  %vm976_vm10 = vcmask 523264  }
  0x70   : > { %1192 = vmatpush3.bf16.msra.mxu0 %v1328_v1  ;;  %1252 = vmatpush3.bf16.msra.mxu1 %v1328_v1  ;;  %v1336_v21 = vld [vmem:[#allocation7 + $0x28] sm:$0xff]   ;;  %v303_v23 = vld [vmem:[%s289_s11] sm:$0xff]  ;;  %s1155_s9 = sshll.u32 %s1556_s22, 7  ;;  %s284_s12 = scalar_lea.vmem [#allocation8], %s1121_s30 }
  0x71   : > { %1201 = vmatprep.subr.bf16.mxu1 %v1329_v12  ;;  %1213 = vmatprep.subr.bf16.mxu0 %v1330_v15  ;;  %s1008_s13 = sshll.u32 %s284_s12, 4  ;;  %s1826_s6 = scalar_lea.hbm %s1875_s5, %s1155_s9  ;;  %s1828_s13 = int_to_ptr.vmem [resolvable:$true] %s1008_s13 }
  0x72   : > { %989 = vperm.xlu0 %1326, %v303_v23   ;;  %s995_s24 = scalar_lea.sflag [#allocation4], %s1707_s29  ;;  %s1423_s26 = scalar_lea.vmem %s1828_s13, 128 }
  0x73   : > { %1194 = vmatmul.mubr.msk.bf16.vlgmr.msra.gmra.mrb[0].mxu0 %vm320_vm0, %v300_v13  ;;  %1198 = vmatmul.mubr.msk.bf16.vlgmr.msra.gmra.mrb[0].mxu1 %vm320_vm0, %v302_v14  ;;  %p1424_p0 = scmp.ne.s32.totalorder %s1828_s13, %s1423_s26  ;;  %p1889_p1 = scmp.ne.s32.totalorder %s1884_s23, 0 }
  0x74   : > { %1202 = vmatpush3.bf16.msra.mxu1 %v1329_v12  ;;  %1214 = vmatpush3.bf16.msra.mxu0 %v1330_v15  ;;  %s1504_s22 = smov [#allocation8]  }
  0x75   : > { %1203 = vmatprep.subr.bf16.mxu1 %v1331_v16  ;;  %1215 = vmatprep.subr.bf16.mxu0 %v1332_v17  ;;  %p1425_p3 = pnand %p1424_p0, %p1889_p1  ;;  %s1427_s8 = sshll.u32 %s1504_s22, 4  ;;  %s1428_s8 = int_to_ptr.vmem [resolvable:$false] %s1427_s8 }
  0x76   : > { %1205 = vmatprep.mubr.msk.bf16.mxu1 %vm320_vm0, %v299_v5  ;;  %1217 = vmatprep.mubr.msk.bf16.mxu0 %vm320_vm0, %v299_v5  ;;  %s1429_s10 = scalar_lea.vmem %s1428_s8, 256  ;;  %p1430_p9 = scmp.lt.s32.totalorder %s1828_s13, %s1428_s8 }
  0x77   : > { %p1426_p7 = pneg %p1425_p3  ;;  %p1431_p12 = scmp.lt.s32.totalorder %s1429_s10, %s1423_s26 }
  0x78   : > { %1204 = vmatpush3.bf16.msra.mxu1 %v1331_v16  ;;  %1216 = vmatpush3.bf16.msra.mxu0 %v1332_v17 }
  0x79   : > { %1225 = vmatprep.subr.bf16.mxu1 %v1333_v18  ;;  %1237 = vmatprep.subr.bf16.mxu0 %v1334_v19  ;;  %p1432_p2 = por %p1431_p12, %p1430_p9 }
  0x7b   : > { %1206 = vmatmul.mubr.msk.bf16.vlgmr.msra.gmra.mrb[4].mxu1 %vm320_vm0, %v300_v13  ;;  %1218 = vmatmul.mubr.msk.bf16.vlgmr.msra.gmra.mrb[4].mxu0 %vm320_vm0, %v300_v13  ;;  %p1433_p13 = pnand %p1432_p2, %p1426_p7 }
  0x7c   : > { %1226 = vmatpush3.bf16.msra.mxu1 %v1333_v18  ;;  %1238 = vmatpush3.bf16.msra.mxu0 %v1334_v19 }
  0x7d   : > { %1209 = vmatprep.mubr.msk.bf16.mxu1 %vm320_vm0, %v301_v9  ;;  %1221 = vmatprep.mubr.msk.bf16.mxu0 %vm320_vm0, %v301_v9 }
  0x7e   : > { %1227 = vmatprep.subr.bf16.mxu1 %v1335_v20  ;;  %1239 = vmatprep.subr.bf16.mxu0 %v1336_v21 }
  0x80   : > { %1228 = vmatpush3.bf16.msra.mxu1 %v1335_v20  ;;  %1240 = vmatpush3.bf16.msra.mxu0 %v1336_v21 }
  0x83   : > { %1210 = vmatmul.mubr.msk.bf16.gmra.mrb[8].mxu1 %vm320_vm0, %v302_v14  ;;  %1222 = vmatmul.mubr.msk.bf16.gmra.mrb[8].mxu0 %vm320_vm0, %v302_v14 }
  0x84   : > { %1229 = vmatprep.mubr.msk.bf16.mxu1 %vm320_vm0, %v299_v5  ;;  %1241 = vmatprep.mubr.msk.bf16.mxu0 %vm320_vm0, %v299_v5 }
  0x8b   : > { %1230 = vmatmul.mubr.msk.bf16.vlgmr.msra.gmra.mrb[12].mxu1 %vm320_vm0, %v300_v13  ;;  %1242 = vmatmul.mubr.msk.bf16.vlgmr.msra.gmra.mrb[12].mxu0 %vm320_vm0, %v300_v13 }
  0x8c   : > { %1233 = vmatprep.mubr.msk.bf16.mxu1 %vm320_vm0, %v301_v9  ;;  %1245 = vmatprep.mubr.msk.bf16.mxu0 %vm320_vm0, %v301_v9 }
  0x93   : > { %1234 = vmatmul.mubr.msk.bf16.gmra.mrb[16].mxu1 %vm320_vm0, %v302_v14  ;;  %1246 = vmatmul.mubr.msk.bf16.gmra.mrb[16].mxu0 %vm320_vm0, %v302_v14 }
 0x146   : > { %v1195_v24 = vpop.f32.mrb[0].mxu0  ;;  %v1199_v25 = vpop.f32.mrb[0].mxu1 }
 0x147   : > { %v367_v26 = vpop.f32.mrb[1].mxu0  ;;  %v383_v27 = vpop.f32.mrb[1].mxu1 }
 0x148   : > { %v1196_v28 = vpop.f32.mrb[2].mxu0  ;;  %v1200_v29 = vpop.f32.mrb[2].mxu1 }
 0x149   : > { %v370_v30 = vpop.f32.mrb[3].mxu0  ;;  %v1744_v31 = vpop.f32.mrb[3].mxu1 }
 0x14e   : > { %v1207_v32 = vpop.f32.mrb[4].mxu1  ;;  %v1746_v33 = vpop.f32.mrb[4].mxu0 }
 0x14f   : > { %v490_v34 = vrot.slane %v1207_v32, 1  ;;  %v449_v35 = vpop.f32.mrb[5].mxu1  ;;  %v1748_v36 = vpop.f32.mrb[5].mxu0 }
 0x150   : > { %v488_v37 = vrot.slane %v449_v35, 1  ;;  %v1208_v38 = vpop.f32.mrb[6].mxu1  ;;  %v1750_v39 = vpop.f32.mrb[6].mxu0 }
 0x151   : > { %v506_v40 = vadd.f32 %v1195_v24, %v490_v34  ;;  %v491_v41 = vrot.slane %v1208_v38, 1  ;;  %v452_v42 = vpop.f32.mrb[7].mxu1  ;;  %v1752_v43 = vpop.f32.mrb[7].mxu0 }
 0x152   : > { %v504_v44 = vadd.f32 %v488_v37, %v367_v26  ;;  %v489_v45 = vrot.slane %v452_v42, 1 }
 0x153   : > { %v527_v46 = vsel %vm512_vm1, %v506_v40, -inf  ;;  %v507_v47 = vadd.f32 %v1196_v28, %v491_v41 }
 0x154   : > { %v528_v48 = vrot.slane %v527_v46, 4  ;;  %v513_v49 = vsel %vm512_vm1, %v504_v44, -inf  ;;  %v505_v50 = vadd.f32 %v489_v45, %v370_v30 }
 0x155   : > { %v514_v51 = vrot.slane %v513_v49, 4  ;;  %v534_v52 = vsel %vm512_vm1, %v507_v47, -inf }
 0x156   : > { %v529_v53 = vmax.f32 %v527_v46, %v528_v48  ;;  %v535_v54 = vrot.slane %v534_v52, 4  ;;  %v520_v55 = vsel %vm512_vm1, %v505_v50, -inf  ;;  %v1211_v56 = vpop.f32.mrb[8].mxu1  ;;  %v1758_v57 = vpop.f32.mrb[8].mxu0 }
 0x157   : > { %v515_v58 = vmax.f32 %v513_v49, %v514_v51  ;;  %v521_v59 = vrot.slane %v520_v55, 4  ;;  %v494_v60 = vrot.slane %v1211_v56, 1  ;;  %v465_v61 = vpop.f32.mrb[9].mxu1  ;;  %v1760_v62 = vpop.f32.mrb[9].mxu0 }
 0x158   : > { %v530_v63 = vrot.slane %v529_v53, 2  ;;  %v536_v0 = vmax.f32 %v534_v52, %v535_v54  ;;  %v492_v1 = vrot.slane %v465_v61, 1  ;;  %v1212_v2 = vpop.f32.mrb[10].mxu1  ;;  %v1762_v3 = vpop.f32.mrb[10].mxu0 }
 0x159   : > { %v516_v4 = vrot.slane %v515_v58, 2  ;;  %v522_v5 = vmax.f32 %v520_v55, %v521_v59  ;;  %v510_v6 = vadd.f32 %v1199_v25, %v494_v60  ;;  %v495_v7 = vrot.slane %v1212_v2, 1  ;;  %v468_v8 = vpop.f32.mrb[11].mxu1  ;;  %v1764_v9 = vpop.f32.mrb[11].mxu0 }
 0x15a   : > { %v537_v10 = vrot.slane %v536_v0, 2  ;;  %v508_v11 = vadd.f32 %v492_v1, %v383_v27  ;;  %v493_v12 = vrot.slane %v468_v8, 1  ;;  %v531_v17 = vmax.f32 %v529_v53, %v530_v63 }
 0x15b   : > { %v517_v13 = vmax.f32 %v515_v58, %v516_v4  ;;  %v523_v14 = vrot.slane %v522_v5, 2  ;;  %v555_v15 = vsel %vm512_vm1, %v510_v6, -inf  ;;  %v511_v16 = vadd.f32 %v1200_v29, %v495_v7 }
 0x15c   : > { %v556_v18 = vrot.slane %v555_v15, 4  ;;  %v541_v19 = vsel %vm512_vm1, %v508_v11, -inf  ;;  %v538_v24 = vmax.f32 %v536_v0, %v537_v10  ;;  %v509_v32 = vadd.f32 %v493_v12, %v1744_v31 }
 0x15d   : > { %v518_v20 = vrot.slane %v517_v13, 1  ;;  %v524_v21 = vmax.f32 %v522_v5, %v523_v14  ;;  %v542_v22 = vrot.slane %v541_v19, 4  ;;  %v562_v23 = vsel %vm512_vm1, %v511_v16, -inf }
 0x15e   : > { %v557_v25 = vmax.f32 %v555_v15, %v556_v18  ;;  %v563_v26 = vrot.slane %v562_v23, 4  ;;  %v1231_v28 = vpop.f32.mrb[12].mxu1  ;;  %v1243_v27 = vpop.f32.mrb[12].mxu0  ;;  %v532_v35 = vrot.slane %v531_v17, 1  ;;  %v548_v46 = vsel %vm512_vm1, %v509_v32, -inf }
 0x15f   : > { %v525_v30 = vrot.slane %v524_v21, 1  ;;  %v701_v34 = vpop.f32.mrb[13].mxu1  ;;  %v815_v29 = vpop.f32.mrb[13].mxu0  ;;  %v543_v38 = vmax.f32 %v541_v19, %v542_v22  ;;  %v742_v40 = vrot.slane %v1231_v28, 1  ;;  %v519_v44 = vmax.f32 %v517_v13, %v518_v20 }
 0x160   : > { %v558_v37 = vrot.slane %v557_v25, 2  ;;  %v1232_v41 = vpop.f32.mrb[14].mxu1  ;;  %v1244_v42 = vpop.f32.mrb[14].mxu0  ;;  %v856_v47 = vrot.slane %v1243_v27, 2  ;;  %v539_v50 = vrot.slane %v538_v24, 1  ;;  %v564_v51 = vmax.f32 %v562_v23, %v563_v26 }
 0x161   : > { %v526_v45 = vmax.f32 %v524_v21, %v525_v30  ;;  %v704_v48 = vpop.f32.mrb[15].mxu1  ;;  %v818_v49 = vpop.f32.mrb[15].mxu0  ;;  %v549_v52 = vrot.slane %v548_v46, 4  ;;  %v758_v31 = vadd.f32 %v1746_v33, %v742_v40  ;;  %v740_v54 = vrot.slane %v701_v34, 1 }
 0x162   : > { %v854_v55 = vrot.slane %v815_v29, 2  ;;  %v1775_v56 = vmax.f32 %v557_v25, %v558_v37  ;;  %v544_v58 = vrot.slane %v543_v38, 2  ;;  %v1777_v60 = vmax.f32 %v531_v17, %v532_v35 }
 0x163   : > { %v1773_v53 = vsel %vm943_vm2, %v526_v45, %v519_v44  ;;  %v872_v59 = vadd.f32 %v856_v47, %v758_v31  ;;  %v756_v61 = vadd.f32 %v740_v54, %v1748_v36  ;;  %v743_v63 = vrot.slane %v1232_v41, 1 }
 0x164   : > { %v1780_v0 = vmax.f32 %v538_v24, %v539_v50  ;;  %v565_v1 = vrot.slane %v564_v51, 2  ;;  %v550_v2 = vmax.f32 %v548_v46, %v549_v52  ;;  %v857_v10 = vrot.slane %v1244_v42, 2 }
 0x165   : > { %v893_v33 = vsel %vm878_vm3, %v872_v59, -inf  ;;  %v870_v7 = vadd.f32 %v854_v55, %v756_v61  ;;  %v759_v8 = vadd.f32 %v1750_v39, %v743_v63  ;;  %v560_v13 = vrot.slane %v1775_v56, 1 }
 0x166   : > { %v1235_v4 = vpop.f32.mrb[16].mxu1  ;;  %v1247_v5 = vpop.f32.mrb[16].mxu0  ;;  %v894_v6 = vrot.slane %v893_v33, 4  ;;  %v545_v14 = vmax.f32 %v543_v38, %v544_v58  ;;  %v741_v36 = vrot.slane %v704_v48, 1  ;;  %v855_v20 = vrot.slane %v818_v49, 2 }
 0x167   : > { %v717_v11 = vpop.f32.mrb[17].mxu1  ;;  %v831_v12 = vpop.f32.mrb[17].mxu0  ;;  %v746_v15 = vrot.slane %v1235_v4, 1  ;;  %v879_v18 = vsel %vm878_vm3, %v870_v7, -inf  ;;  %v873_v19 = vadd.f32 %v857_v10, %v759_v8  ;;  %v860_v21 = vrot.slane %v1247_v5, 2 }
 0x168   : > { %v1236_v16 = vpop.f32.mrb[18].mxu1  ;;  %v1248_v17 = vpop.f32.mrb[18].mxu0  ;;  %v895_v24 = vmax.f32 %v893_v33, %v894_v6  ;;  %v880_v25 = vrot.slane %v879_v18, 4  ;;  %v757_v39 = vadd.f32 %v741_v36, %v1752_v43  ;;  %v551_v28 = vrot.slane %v550_v2, 2 }
 0x169   : > { %v720_v22 = vpop.f32.mrb[19].mxu1  ;;  %v834_v23 = vpop.f32.mrb[19].mxu0  ;;  %v762_v26 = vadd.f32 %v1758_v57, %v746_v15  ;;  %v900_v27 = vsel %vm878_vm3, %v873_v19, -inf  ;;  %v744_v30 = vrot.slane %v717_v11, 1  ;;  %v858_v32 = vrot.slane %v831_v12, 2 }
 0x16a   : > { %v1789_v34 = vmax.f32 %v564_v51, %v565_v1  ;;  %v881_v29 = vmax.f32 %v879_v18, %v880_v25  ;;  %v901_v35 = vrot.slane %v900_v27, 4  ;;  %v871_v37 = vadd.f32 %v855_v20, %v757_v39 }
 0x16b   : > { %v546_v38 = vrot.slane %v545_v14, 1  ;;  %v876_v40 = vadd.f32 %v860_v21, %v762_v26  ;;  %v760_v41 = vadd.f32 %v744_v30, %v1760_v62  ;;  %v747_v42 = vrot.slane %v1236_v16, 1 }
 0x16c   : > { %v896_v44 = vrot.slane %v895_v24, 2  ;;  %v882_v43 = vrot.slane %v881_v29, 2  ;;  %v902_v45 = vmax.f32 %v900_v27, %v901_v35  ;;  %v886_v57 = vsel %vm878_vm3, %v871_v37, -inf }
 0x16d   : > { %v552_v46 = vmax.f32 %v550_v2, %v551_v28  ;;  %v887_v47 = vrot.slane %v886_v57, 4  ;;  %v921_v48 = vsel %vm878_vm3, %v876_v40, -inf  ;;  %v874_v49 = vadd.f32 %v858_v32, %v760_v41 }
 0x16e   : > { %v903_v50 = vrot.slane %v902_v45, 2  ;;  %v922_v51 = vrot.slane %v921_v48, 4  ;;  %v763_v52 = vadd.f32 %v1762_v3, %v747_v42  ;;  %v861_v31 = vrot.slane %v1248_v17, 2 }
 0x16f   : > { %v883_v54 = vmax.f32 %v881_v29, %v882_v43  ;;  %v888_v62 = vmax.f32 %v886_v57, %v887_v47  ;;  %v907_v55 = vsel %vm878_vm3, %v874_v49, -inf  ;;  %v745_v58 = vrot.slane %v720_v22, 1 }
 0x170   : > { %v897_v59 = vmax.f32 %v895_v24, %v896_v44  ;;  %v904_v61 = vmax.f32 %v902_v45, %v903_v50  ;;  %v923_v63 = vmax.f32 %v921_v48, %v922_v51  ;;  %v908_v1 = vrot.slane %v907_v55, 4 }
 0x171   : > { %v889_v2 = vrot.slane %v888_v62, 2  ;;  %v877_v33 = vadd.f32 %v861_v31, %v763_v52  ;;  %v761_v4 = vadd.f32 %v745_v58, %v1764_v9  ;;  %v859_v5 = vrot.slane %v834_v23, 2 }
 0x172   : > { %v561_v3 = vmax.f32 %v1775_v56, %v560_v13  ;;  %v547_v6 = vmax.f32 %v545_v14, %v546_v38  ;;  %v553_v7 = vrot.slane %v552_v46, 1  ;;  %v909_v8 = vmax.f32 %v907_v55, %v908_v1 }
 0x173   : > { %v884_v10 = vrot.slane %v883_v54, 1  ;;  %v890_v11 = vmax.f32 %v888_v62, %v889_v2  ;;  %v928_v12 = vsel %vm878_vm3, %v877_v33, -inf  ;;  %v875_v36 = vadd.f32 %v859_v5, %v761_v4  ;;  %v1153_v62 = vld [vmem:[%s1872_s2] ss:$0 sm:$0xff] }
 0x174   : > { %v898_v15 = vrot.slane %v897_v59, 1  ;;  %v905_v16 = vrot.slane %v904_v61, 1  ;;  %v910_v17 = vrot.slane %v909_v8, 2  ;;  %v929_v18 = vrot.slane %v928_v12, 4 }
 0x175   : > { %v891_v19 = vrot.slane %v890_v11, 1  ;;  %v924_v20 = vrot.slane %v923_v63, 2  ;;  %v914_v9 = vsel %vm878_vm3, %v875_v36, -inf  ;;  %v946_v56 = vsel %vm945_vm4, %v1777_v60, %v1773_v53 }
 0x176   : > { %v567_v13 = vrot.slane %v1789_v34, 1  ;;  %v911_v14 = vmax.f32 %v909_v8, %v910_v17  ;;  %v930_v21 = vmax.f32 %v928_v12, %v929_v18  ;;  %v915_v22 = vrot.slane %v914_v9, 4 }
 0x177   : > { %v554_v23 = vmax.f32 %v552_v46, %v553_v7  ;;  %v885_v24 = vmax.f32 %v883_v54, %v884_v10  ;;  %v892_v25 = vmax.f32 %v890_v11, %v891_v19  ;;  %v948_v39 = vsel %vm947_vm5, %v1780_v0, %v946_v56  ;;  %v990_v54 = vpop.permute.xlu0 %989 }
 0x178   : > { %v899_v26 = vmax.f32 %v897_v59, %v898_v15  ;;  %v912_v28 = vrot.slane %v911_v14, 1  ;;  %v931_v27 = vrot.slane %v930_v21, 2  ;;  %v916_v30 = vmax.f32 %v914_v9, %v915_v22 }
 0x179   : > { %v906_v32 = vmax.f32 %v904_v61, %v905_v16  ;;  %v966_v29 = vsel %vm943_vm2, %v892_v25, %v885_v24  ;;  %v925_v35 = vmax.f32 %v923_v63, %v924_v20  ;;  %v950_v53 = vsel %vm949_vm6, %v547_v6, %v948_v39 }
 0x17a   : > { %v913_v60 = vmax.f32 %v911_v14, %v912_v28  ;;  %v932_v37 = vmax.f32 %v930_v21, %v931_v27  ;;  %v917_v38 = vrot.slane %v916_v30, 2  ;;  %v967_v40 = vsel %vm945_vm4, %v899_v26, %v966_v29 }
 0x17b   : > { %v968_v41 = vsel %vm947_vm5, %v906_v32, %v967_v40  ;;  %v568_v42 = vmax.f32 %v1789_v34, %v567_v13  ;;  %v952_v0 = vsel %vm951_vm7, %v554_v23, %v950_v53  ;;  %v926_v57 = vrot.slane %v925_v35, 1 }
 0x17c   : > { %v918_v44 = vmax.f32 %v916_v30, %v917_v38  ;;  %v969_v43 = vsel %vm949_vm6, %v913_v60, %v968_v41  ;;  %v954_v45 = vsel %vm953_vm8, %v561_v3, %v952_v0  ;;  %v933_v48 = vrot.slane %v932_v37, 1 }
 0x17d   : > { %v956_v46 = vsel %vm955_vm9, %v568_v42, %v954_v45  ;;  %v927_v50 = vmax.f32 %v925_v35, %v926_v57 }
 0x17e   : > { %v919_v47 = vrot.slane %v918_v44, 1  ;;  %v934_v51 = vmax.f32 %v932_v37, %v933_v48 }
 0x180   : > { %v920_v49 = vmax.f32 %v918_v44, %v919_v47 }
 0x182   : > { %v970_v52 = vsel %vm951_vm7, %v920_v49, %v969_v43 }
 0x183   : > { %v971_v34 = vsel %vm953_vm8, %v927_v50, %v970_v52 }
 0x184   : > { %v972_v31 = vsel %vm955_vm9, %v934_v51, %v971_v34 }
 0x185   : > { %973 = vrot.lane.b32.xlu0 %v972_v31, %s1503_s28 }
 0x1f7   : > { %v974_v55 = vpop.permute.xlu0 %973 }
 0x1f8   : > { %v977_v58 = vsel %vm976_vm10, %v956_v46, %v974_v55 }
 0x1f9   : > { %v985_v59 = vadd.f32 %v1153_v62, %v977_v58 }
 0x1fb   : > { %v986_v61 = vmax.f32 %v985_v59, 0.0 }
 0x1fd   : > { %v992_v63 = vmul.f32 %v990_v54, %v986_v61 }
 0x1ff   : > { %993 = vst [vmem:[%s284_s12] sm:$0xff] %v992_v63 }
 0x200   : > { %1436 = shalt.err (!%p1433_p13)
}
 0x201   : > { %s1437_s29 = scalar_lea.hbm %s1826_s6, 128  ;;  %s1441_s30 = scalar_lea.hbm %s1875_s5, 256 }
 0x202   : > { %p1438_p6 = scmp.ne.s32.totalorder %s1826_s6, %s1437_s29  ;;  %p1442_p5 = scmp.lt.u32.totalorder %s1826_s6, %s1875_s5 }
 0x203   : > { %p1443_p11 = scmp.lt.u32.totalorder %s1441_s30, %s1437_s29  ;;  %p1445_p0 = scmp.lt.u32.totalorder %s1437_s29, %s1826_s6 }
 0x204   : > { %p1439_p10 = pnand %p1438_p6, %p1889_p1 }
 0x205   : > { %p1444_p8 = por %p1443_p11, %p1442_p5 }
 0x206   : > { %p1440_p4 = pneg %p1439_p10 }
 0x207   : > { %p1446_p3 = por %p1445_p0, %p1444_p8 }
 0x209   : > { %p1447_p7 = pnand %p1446_p3, %p1440_p4 }
 0x20b   : > { %1450 = shalt.err (!%p1447_p7)
}
 0x20c   : > { %1263 = dma.vmem_to_hbm [thread:$0]  (%p1889_p1), %s1828_s13, 128, %s1826_s6, %s995_s24  }
 0x20d PF: > { %s1020_s9 = sand.u32 1, %s1481_s18   ;;  %p1890_p9 = scmp.ne.s32.totalorder %s1880_s25, 0 }
 0x20e   : > { %p1891_p12 = scmp.ge.s32.totalorder %s1493_s21, 2  ;;  %s1021_s12 = scalar_lea.sflag [#allocation4], %s1020_s9 }
 0x210   : > { %p1277_p2 = pnand %p1891_p12, %p1890_p9 }
 0x212   : > { %1476 = dma.done.wait (!%p1277_p2), %s1021_s12, 128  }
 0x213   : > { %1478 = vsyncadd (!%p1277_p2), %s1021_s12, 4294967168  ;;  %p19_p13 = scmp.ge.s32.totalorder %s1645_s14, 4   ;;  %s1892_s18 = smov %s1485_s19 }
 0x214   : > { %s1893_s19 = smov %s1489_s20  ;;  %s1894_s20 = smov %s1661_s27 }
 0x215   : > { %s1895_s21 = smov %s1645_s14  ;;  %21 = sbr.rel (!%p19_p13) target bundleno = 6 (0x6), region = 99 }
 0x21c   :  { %1026 = vsyncpa [#allocation3], 1 }
 0x21d   :  { %1028 = vsyncpa [#allocation3 + $0x1], 1 }
 0x21e   :  { %1029 = vsyncpa [#allocation6], 1 }
 0x21f   :  { %1030 = vsyncpa [#allocation4], 1 }
 0x220   :  { %1032 = vsyncpa [#allocation4 + $0x1], 1 }

</bundles_post_ra>
